<compile_context>
chip_gen: v7x
topology: tpu7x:2x2x1
jax: 0.10.0
libtpu: 0.0.40
codegen_flags: <defaults>
</compile_context>

<pallas_src>
import math
from typing import NamedTuple

import jax
import jax.numpy as jnp
from jax.experimental import pallas as pl
from jax.experimental.pallas import tpu as pltpu


def _round_up(x, m):
    return (x + m - 1) // m * m


# ---------------------------------------------------------------------------
# Kernel
# ---------------------------------------------------------------------------
def _encoder_kernel(x_ref, w1_ref, b1_ref, w2_ref, b2_ref, out_ref, acc_ref):
    """One (batch-tile, K-tile) grid step.

    grid = (batch tiles [parallel], K reduction tiles [arbitrary, last]).
    acc_ref accumulates x @ W1 in f32 across K; on the last K step we add the
    bias, apply tanh, run the (small) second matmul, and write one lane-dense
    [tm, l2p] block.
    """
    k = pl.program_id(1)

    # f32 x tile cast to the bf16 matmul dtype in-register; f32 MXU accumulate.
    prod = jnp.dot(x_ref[...].astype(w1_ref.dtype), w1_ref[...],
                   preferred_element_type=jnp.float32)

    @pl.when(k == 0)
    def _init():
        acc_ref[...] = prod          # first K step: plain store, no zero+add

    @pl.when(k > 0)
    def _accum():
        acc_ref[...] += prod

    @pl.when(k == pl.num_programs(1) - 1)
    def _finalize():
        # Bias add + tanh in f32 (v5e has no bf16 VPU/EUP path).
        h = jnp.tanh(acc_ref[...] + b1_ref[...])
        out = (jnp.dot(h.astype(w2_ref.dtype), w2_ref[...],
                       preferred_element_type=jnp.float32)
               + b2_ref[...])
        out_ref[...] = out.astype(out_ref.dtype)


# ---------------------------------------------------------------------------
# One-time parameter preparation (done at model-load time, NOT per call)
# ---------------------------------------------------------------------------
class EncoderParams(NamedTuple):
    w1_t: jax.Array   # [k_pad, H]   compute dtype, zero-padded K rows
    b1: jax.Array     # [1, H]       f32
    w2_t: jax.Array   # [H, l2p]     compute dtype, zero-padded output lanes
    b2: jax.Array     # [1, l2p]     f32
    d_in: int
    hidden: int
    latent: int
    l2: int
    l2p: int
    k_pad: int
    tk: int


def prepare_encoder_params(params, latent_dim, *, tk=2048,
                           compute_dtype=jnp.bfloat16):
    """params: [(W1 [H, D_in], b1 [H]), (W2 [2L, H], b2 [2L])] in torch.nn.Linear
    layout. Pre-materializes the kernel-friendly layout once."""
    (w1, b1), (w2, b2) = params
    H, D_in = w1.shape
    L2 = w2.shape[0]
    assert L2 == 2 * latent_dim

    k128 = _round_up(D_in, 128)
    tk = max(128, min(_round_up(tk, 128), k128))
    k_pad = _round_up(k128, tk)                 # zero rows contribute nothing
    l2p = _round_up(L2, 128)                    # lane-dense output block

    w1_t = jnp.pad(w1.T, ((0, k_pad - D_in), (0, 0))).astype(compute_dtype)
    w2_t = jnp.pad(w2.T, ((0, 0), (0, l2p - L2))).astype(compute_dtype)
    b1_2d = b1.reshape(1, H).astype(jnp.float32)
    b2_2d = jnp.pad(b2, (0, l2p - L2)).reshape(1, l2p).astype(jnp.float32)

    return EncoderParams(w1_t, b1_2d, w2_t, b2_2d,
                         D_in, H, latent_dim, L2, l2p, k_pad, tk)


# ---------------------------------------------------------------------------
# Tile selection / VMEM budgeting
# ---------------------------------------------------------------------------
_VMEM_BUDGET = 36 * 1024 * 1024       # keeps the 1.25x limit under v7x's 64 MiB


def _vmem_bytes(tm, tk, H, l2p):
    x_buf = 2 * tm * tk * 4            # double-buffered f32 x tile
    w1_buf = 2 * tk * H * 2            # double-buffered bf16 W1 slab
    acc = tm * H * 4                   # f32 accumulator scratch
    w2 = H * l2p * 2                   # resident W2
    out = 2 * tm * l2p * 4             # double-buffered f32 output block
    small = 2 * (H + l2p) * 4          # biases
    return x_buf + w1_buf + acc + w2 + out + small


def _choose_tm(B, tk, H, l2p, tm=None):
    if tm is not None:
        return max(8, _round_up(min(tm, _round_up(B, 8)), 8))
    # Whole batch in one tile (W1 streamed from HBM exactly once) if it fits.
    full = _round_up(B, 8)
    if _vmem_bytes(full, tk, H, l2p) <= _VMEM_BUDGET:
        return full
    # Otherwise the largest 256-row (MXU-matched) tile that fits the budget.
    cand = max(256, _round_up(full // 2, 256))
    while cand > 256 and _vmem_bytes(cand, tk, H, l2p) > _VMEM_BUDGET:
        cand -= 256
    return max(256, cand)


# ---------------------------------------------------------------------------
# Forward
# ---------------------------------------------------------------------------
def multvae_encoder_forward(x, prepped: EncoderParams, *, tm=None):
    """x: [B, D_in] f32. Returns (mu_q [B, L], logvar_q [B, L]) in f32."""
    B, D_in = x.shape
    assert D_in == prepped.d_in
    H, l2p, k_pad, tk = prepped.hidden, prepped.l2p, prepped.k_pad, prepped.tk

    tm = _choose_tm(B, tk, H, l2p, tm)
    b_pad = _round_up(B, tm)

    # x stays f32 (bf16 cast happens in-kernel); pad only when actually needed.
    if (b_pad, k_pad) != (B, D_in):
        x = jnp.pad(x, ((0, b_pad - B), (0, k_pad - D_in)))

    grid = (b_pad // tm, k_pad // tk)
    n_btiles = grid[0]

    est_vmem = _vmem_bytes(tm, tk, H, l2p)
    vmem_limit = int(max(32 * 1024 * 1024,
                         min(est_vmem * 5 // 4, 48 * 1024 * 1024)))

    cost = pl.CostEstimate(
        flops=2 * b_pad * (k_pad * H + H * l2p),
        transcendentals=b_pad * H,
        bytes_accessed=int(x.size * x.dtype.itemsize
                           + n_btiles * prepped.w1_t.nbytes   # W1 per batch tile
                           + prepped.w2_t.nbytes
                           + prepped.b1.nbytes + prepped.b2.nbytes
                           + b_pad * l2p * 4),
    )

    grid_spec = pltpu.PrefetchScalarGridSpec(
        num_scalar_prefetch=0,
        grid=grid,
        in_specs=[
            pl.BlockSpec((tm, tk), lambda i, k: (i, k)),   # x tile (f32)
            pl.BlockSpec((tk, H), lambda i, k: (k, 0)),    # W1 slab (K-tiled)
            pl.BlockSpec((1, H), lambda i, k: (0, 0)),     # b1 (resident)
            pl.BlockSpec((H, l2p), lambda i, k: (0, 0)),   # W2 (resident)
            pl.BlockSpec((1, l2p), lambda i, k: (0, 0)),   # b2 (resident)
        ],
        out_specs=pl.BlockSpec((tm, l2p), lambda i, k: (i, 0)),  # lane-dense
        scratch_shapes=[pltpu.VMEM((tm, H), jnp.float32)],
    )

    out = pl.pallas_call(
        _encoder_kernel,
        out_shape=jax.ShapeDtypeStruct((b_pad, l2p), jnp.float32),
        grid_spec=grid_spec,
        compiler_params=pltpu.CompilerParams(
            dimension_semantics=("parallel", "arbitrary"),
            vmem_limit_bytes=vmem_limit,
        ),
        cost_estimate=cost,
    )(x, prepped.w1_t, prepped.b1, prepped.w2_t, prepped.b2)

    L = prepped.latent
    # torch.chunk(x, 2, dim=1) — a free slice in the wrapper.
    return out[:B, :L], out[:B, L:2 * L]


# ---------------------------------------------------------------------------
# PyTorch-equivalent init & reference forward
# ---------------------------------------------------------------------------
def init_encoder_params(key, q_dims):
    """Mirror the PyTorch init: W ~ U(-limit, limit), limit = sqrt(3/n),
    n = (in+out)/2; bias ~ N(0, 0.001). Last layer has out_features doubled."""
    params = []
    n_layers = len(q_dims) - 1
    for i in range(n_layers):
        in_f = q_dims[i]
        out_f = q_dims[i + 1]
        if i == n_layers - 1:
            out_f *= 2
        key, kw, kb = jax.random.split(key, 3)
        n = (in_f + out_f) / 2.0
        limit = math.sqrt(3.0 / n)
        # torch.nn.Linear weight shape is [out, in]; keep that convention.
        w = jax.random.uniform(kw, (out_f, in_f), dtype=jnp.float32,
                               minval=-limit, maxval=limit)
        b = 0.001 * jax.random.normal(kb, (out_f,), dtype=jnp.float32)
        params.append((w, b))
    return params


def reference_forward(x, params, latent_dim, compute_dtype=jnp.float32):
    h = x
    n_layers = len(params)
    for i, (w, b) in enumerate(params):
        h = jnp.dot(h.astype(compute_dtype), w.T.astype(compute_dtype),
                    preferred_element_type=jnp.float32) + b
        if i != n_layers - 1:
            h = jnp.tanh(h)
    return h[:, :latent_dim], h[:, latent_dim:]


# ---------------------------------------------------------------------------
# Demo / self-test
# ---------------------------------------------------------------------------
if __name__ == "__main__":
    key = jax.random.PRNGKey(0)

    # Small shapes consistent with the module (q_dims[0] plays n_items).
    q_dims = [256, 128, 64]
    latent_dim = q_dims[-1]
    batch = 256

    key, kx = jax.random.split(key)
    x = jax.random.normal(kx, (batch, q_dims[0]), dtype=jnp.float32)
    params = init_encoder_params(key, q_dims)

    # Config A: multi-tile path (2 batch tiles x 2 K tiles -> exercises the
    # parallel axis and the K accumulator).
    prepped_a = prepare_encoder_params(params, latent_dim, tk=128)
    mu_a, lv_a = multvae_encoder_forward(x, prepped_a, tm=128)

    # Config B: production defaults (tk clamped to D_in, auto tm -> a single
    # batch tile, so W1 is streamed exactly once).
    prepped_b = prepare_encoder_params(params, latent_dim)
    mu_b, lv_b = multvae_encoder_forward(x, prepped_b)

    # Config C: ragged shapes -> exercises batch/K padding and the padded
    # output-lane (l2p) path.
    q_dims_c = [200, 96, 48]
    key, kxc = jax.random.split(key)
    x_c = jax.random.normal(kxc, (50, q_dims_c[0]), dtype=jnp.float32)
    params_c = init_encoder_params(key, q_dims_c)
    prepped_c = prepare_encoder_params(params_c, q_dims_c[-1], tk=128)
    mu_c, lv_c = multvae_encoder_forward(x_c, prepped_c)

    jax.block_until_ready((mu_a, lv_a, mu_b, lv_b, mu_c, lv_c))

    assert mu_a.shape == (batch, latent_dim) and lv_a.shape == (batch, latent_dim)
    assert mu_b.shape == (batch, latent_dim) and lv_b.shape == (batch, latent_dim)
    assert mu_c.shape == (50, q_dims_c[-1]) and lv_c.shape == (50, q_dims_c[-1])

    # Tight check vs. a reference mimicking the bf16-operand / f32-accumulate
    # MXU path; loose check vs. the pure-f32 torch-equivalent forward.
    mu_bf, lv_bf = reference_forward(x, params, latent_dim, jnp.bfloat16)
    for m, l in ((mu_a, lv_a), (mu_b, lv_b)):
        assert jnp.allclose(m, mu_bf, atol=5e-3, rtol=5e-3)
        assert jnp.allclose(l, lv_bf, atol=5e-3, rtol=5e-3)

    mu_f32, lv_f32 = reference_forward(x, params, latent_dim)
    assert jnp.allclose(mu_a, mu_f32, atol=0.2, rtol=0.1)
    assert jnp.allclose(lv_a, lv_f32, atol=0.2, rtol=0.1)

    mu_cb, lv_cb = reference_forward(x_c, params_c, q_dims_c[-1], jnp.bfloat16)
    assert jnp.allclose(mu_c, mu_cb, atol=5e-3, rtol=5e-3)
    assert jnp.allclose(lv_c, lv_cb, atol=5e-3, rtol=5e-3)

    print("KERNEL_OK")
</pallas_src>

<mosaic_0001>
module attributes {stable_mosaic.version = 11 : i64} {
  func.func @_encoder_kernel(%arg0: i32, %arg1: i32, %arg2: memref<128x128xf32, #tpu.memory_space<vmem>>, %arg3: memref<128x128xbf16, #tpu.memory_space<vmem>>, %arg4: memref<1x128xf32, #tpu.memory_space<vmem>>, %arg5: memref<128x128xbf16, #tpu.memory_space<vmem>>, %arg6: memref<1x128xf32, #tpu.memory_space<vmem>>, %arg7: memref<128x128xf32, #tpu.memory_space<vmem>>, %arg8: memref<128x128xf32, #tpu.memory_space<vmem>>) attributes {dimension_semantics = [#tpu.dimension_semantics<parallel>, #tpu.dimension_semantics<arbitrary>], iteration_bounds = array<i64: 2, 2>, scalar_prefetch = 0 : i64, scratch_operands = 1 : i64, tpu.core_type = #tpu.core_type<tc>, window_params = [{transform_indices = @transform_0, window_bounds = array<i64: 128, 128>}, {transform_indices = @transform_1, window_bounds = array<i64: 128, 128>}, {pipeline_mode = #tpu.pipeline_mode<synchronous>, transform_indices = @transform_2, window_bounds = array<i64: 1, 128>}, {pipeline_mode = #tpu.pipeline_mode<synchronous>, transform_indices = @transform_3, window_bounds = array<i64: 128, 128>}, {pipeline_mode = #tpu.pipeline_mode<synchronous>, transform_indices = @transform_4, window_bounds = array<i64: 1, 128>}, {transform_indices = @transform_5, window_bounds = array<i64: 128, 128>}]} {
    %c0 = arith.constant 0 : index
    %c0_0 = arith.constant 0 : index
    %0 = vector.load %arg2[%c0, %c0_0] : memref<128x128xf32, #tpu.memory_space<vmem>>, vector<128x128xf32>
    %1 = arith.truncf %0 : vector<128x128xf32> to vector<128x128xbf16>
    %c0_1 = arith.constant 0 : index
    %c0_2 = arith.constant 0 : index
    %2 = vector.load %arg3[%c0_1, %c0_2] : memref<128x128xbf16, #tpu.memory_space<vmem>>, vector<128x128xbf16>
    %cst = arith.constant dense<0.000000e+00> : vector<128x128xf32>
    %3 = tpu.matmul %1, %2, %cst {dimension_numbers = #tpu.dot_dimension_numbers<[1], [0], [0], [1], [0, 0, 1, 1], [], []>} : vector<128x128xbf16>, vector<128x128xbf16>, vector<128x128xf32> -> vector<128x128xf32>
    %c0_i32 = arith.constant 0 : i32
    %4 = arith.cmpi eq, %arg1, %c0_i32 : i32
    %5 = arith.extui %4 : i1 to i32
    %c0_i32_3 = arith.constant 0 : i32
    %6 = arith.cmpi ne, %5, %c0_i32_3 : i32
    scf.if %6 {
      %c0_7 = arith.constant 0 : index
      %c0_8 = arith.constant 0 : index
      %13 = vector.load %arg8[%c0_7, %c0_8] : memref<128x128xf32, #tpu.memory_space<vmem>>, vector<128x128xf32>
      tpu.vector_store %arg8[%c0_7, %c0_8], %3 {strides = array<i32>} : memref<128x128xf32, #tpu.memory_space<vmem>>, vector<128x128xf32>,
    } else {
    }
    %c0_i32_4 = arith.constant 0 : i32
    %7 = arith.cmpi sgt, %arg1, %c0_i32_4 : i32
    %8 = arith.extui %7 : i1 to i32
    %c0_i32_5 = arith.constant 0 : i32
    %9 = arith.cmpi ne, %8, %c0_i32_5 : i32
    scf.if %9 {
      %c0_7 = arith.constant 0 : index
      %c0_8 = arith.constant 0 : index
      %13 = vector.load %arg8[%c0_7, %c0_8] : memref<128x128xf32, #tpu.memory_space<vmem>>, vector<128x128xf32>
      %14 = arith.addf %13, %3 : vector<128x128xf32>
      %c0_9 = arith.constant 0 : index
      %c0_10 = arith.constant 0 : index
      %15 = vector.load %arg8[%c0_9, %c0_10] : memref<128x128xf32, #tpu.memory_space<vmem>>, vector<128x128xf32>
      tpu.vector_store %arg8[%c0_9, %c0_10], %14 {strides = array<i32>} : memref<128x128xf32, #tpu.memory_space<vmem>>, vector<128x128xf32>,
    } else {
    }
    %c1_i32 = arith.constant 1 : i32
    %10 = arith.cmpi eq, %arg1, %c1_i32 : i32
    %11 = arith.extui %10 : i1 to i32
    %c0_i32_6 = arith.constant 0 : i32
    %12 = arith.cmpi ne, %11, %c0_i32_6 : i32
    scf.if %12 {
      %c0_7 = arith.constant 0 : index
      %c0_8 = arith.constant 0 : index
      %13 = vector.load %arg8[%c0_7, %c0_8] : memref<128x128xf32, #tpu.memory_space<vmem>>, vector<128x128xf32>
      %c0_9 = arith.constant 0 : index
      %c0_10 = arith.constant 0 : index
      %14 = vector.load %arg4[%c0_9, %c0_10] : memref<1x128xf32, #tpu.memory_space<vmem>>, vector<1x128xf32>
      %15 = vector.broadcast %14 : vector<1x128xf32> to vector<128x128xf32>
      %16 = arith.addf %13, %15 : vector<128x128xf32>
      %17 = math.tanh %16 : vector<128x128xf32>
      %18 = arith.truncf %17 : vector<128x128xf32> to vector<128x128xbf16>
      %c0_11 = arith.constant 0 : index
      %c0_12 = arith.constant 0 : index
      %19 = vector.load %arg5[%c0_11, %c0_12] : memref<128x128xbf16, #tpu.memory_space<vmem>>, vector<128x128xbf16>
      %cst_13 = arith.constant dense<0.000000e+00> : vector<128x128xf32>
      %20 = tpu.matmul %18, %19, %cst_13 {dimension_numbers = #tpu.dot_dimension_numbers<[1], [0], [0], [1], [0, 0, 1, 1], [], []>} : vector<128x128xbf16>, vector<128x128xbf16>, vector<128x128xf32> -> vector<128x128xf32>
      %c0_14 = arith.constant 0 : index
      %c0_15 = arith.constant 0 : index
      %21 = vector.load %arg6[%c0_14, %c0_15] : memref<1x128xf32, #tpu.memory_space<vmem>>, vector<1x128xf32>
      %22 = vector.broadcast %21 : vector<1x128xf32> to vector<128x128xf32>
      %23 = arith.addf %20, %22 : vector<128x128xf32>
      %c0_16 = arith.constant 0 : index
      %c0_17 = arith.constant 0 : index
      %24 = vector.load %arg7[%c0_16, %c0_17] : memref<128x128xf32, #tpu.memory_space<vmem>>, vector<128x128xf32>
      tpu.vector_store %arg7[%c0_16, %c0_17], %23 {strides = array<i32>} : memref<128x128xf32, #tpu.memory_space<vmem>>, vector<128x128xf32>,
    } else {
    }
    return
  }
  func.func @transform_0(%arg0: i32, %arg1: i32) -> (i32, i32) {
    %c0_i32 = arith.constant 0 : i32
    return %arg0, %arg1 : i32, i32
  }
  func.func @transform_1(%arg0: i32, %arg1: i32) -> (i32, i32) {
    %c0_i32 = arith.constant 0 : i32
    %c0_i32_0 = arith.constant 0 : i32
    return %arg1, %c0_i32 : i32, i32
  }
  func.func @transform_2(%arg0: i32, %arg1: i32) -> (i32, i32) {
    %c0_i32 = arith.constant 0 : i32
    %c0_i32_0 = arith.constant 0 : i32
    %c0_i32_1 = arith.constant 0 : i32
    return %c0_i32, %c0_i32_0 : i32, i32
  }
  func.func @transform_3(%arg0: i32, %arg1: i32) -> (i32, i32) {
    %c0_i32 = arith.constant 0 : i32
    %c0_i32_0 = arith.constant 0 : i32
    %c0_i32_1 = arith.constant 0 : i32
    return %c0_i32, %c0_i32_0 : i32, i32
  }
  func.func @transform_4(%arg0: i32, %arg1: i32) -> (i32, i32) {
    %c0_i32 = arith.constant 0 : i32
    %c0_i32_0 = arith.constant 0 : i32
    %c0_i32_1 = arith.constant 0 : i32
    return %c0_i32, %c0_i32_0 : i32, i32
  }
  func.func @transform_5(%arg0: i32, %arg1: i32) -> (i32, i32) {
    %c0_i32 = arith.constant 0 : i32
    %c0_i32_0 = arith.constant 0 : i32
    return %arg0, %c0_i32 : i32, i32
  }
}

</mosaic_0001>

<bundles_post_ra>
// kernel: tpu_custom_call.1
= control target key start
LH: loop header
LB: loop body
LE: loop exit
PB: predicated region body
PF: predicated region fallthrough
CT: control target
= control target key end

     0   :  { %s2063_s0 = inlined_call_operand.hbm [shape: f32[256,256], index: 0, kind: input, shape index: {}]   ;;  %s2064_s1 = inlined_call_operand.hbm [shape: bf16[256,128], index: 1, kind: input, shape index: {}]   ;;  %s2065_s2 = inlined_call_operand.vmem [shape: f32[1,128], index: 2, kind: input, shape index: {}]   ;;  %s2066_s3 = inlined_call_operand.hbm [shape: bf16[128,128], index: 3, kind: input, shape index: {}]   ;;  %s2067_s4 = inlined_call_operand.vmem [shape: f32[1,128], index: 4, kind: input, shape index: {}]   ;;  %s2068_s5 = inlined_call_operand.hbm [shape: f32[256,128], index: 5, kind: output, shape index: {}]  }
   0x1   :  { %2090 = sst [smem:[#allocation23_spill]] %s2063_s0 }
   0x2   :  { %2091 = sst [smem:[#allocation24_spill]] %s2065_s2 }
   0x3   :  { %2092 = sst [smem:[#allocation25_spill]] %s2066_s3 }
   0x4   :  { %2093 = sst [smem:[#allocation26_spill]] %s2067_s4 }
   0x5   :  { %2094 = sst [smem:[#allocation27_spill]] %s2068_s5 }
   0x6   :  { %10 = vsyncpa [#allocation4], 0 }
   0x7   :  { %12 = vsyncpa [#allocation4 + $0x1], 0 }
   0x8   :  { %13 = vsyncpa [#allocation7], 0 }
   0x9   :  { %15 = vsyncpa [#allocation7 + $0x1], 0 }
   0xa   :  { %16 = vsyncpa [#allocation5], 0 }
   0xb   :  { %18 = vsyncpa [#allocation5 + $0x1], 0  ;;  %s1613_s18 = smov 0   ;;  %s1615_s19 = smov 0  }
   0xc   :  { %s1617_s20 = smov 0   ;;  %s1619_s21 = smov 0  }
   0xd   :  { %s1621_s22 = smov 0   ;;  %s1623_s23 = smov 0  }
   0xe   :  { %s1625_s24 = smov 0   ;;  %s1627_s25 = smov 0  }
   0xf   :  { %s1629_s26 = smov 0   ;;  %s1631_s27 = smov 0  }
  0x10   :  { %s1633_s28 = smov 0   ;;  %s1635_s29 = smov 0  }
  0x11   :  { %s1637_s30 = smov 0   ;;  %s1639_s6 = smov 0  }
  0x12 LB: > { %2095 = sst [smem:[#allocation14_spill]] %s1518_s18  ;;  %s1680_s7 = sadd.s32 4294967295, %s1570_s6   ;;  %s1570_s6 = sphi %s1639_s6, %s24_s6   ;;  %s1566_s30 = sphi %s1637_s30, %s2156_s30   ;;  %s1562_s29 = sphi %s1635_s29, %s2155_s29   ;;  %s1558_s28 = sphi %s1633_s28, %s2154_s28   ;;  %s1554_s27 = sphi %s1631_s27, %s2153_s27   ;;  %s1550_s26 = sphi %s1629_s26, %s2152_s26   ;;  %s1546_s25 = sphi %s1627_s25, %s2151_s25   ;;  %s1542_s24 = sphi %s1625_s24, %s2150_s24   ;;  %s1538_s23 = sphi %s1623_s23, %s2149_s23   ;;  %s1534_s22 = sphi %s1621_s22, %s2148_s22   ;;  %s1530_s21 = sphi %s1619_s21, %s2147_s21   ;;  %s1526_s20 = sphi %s1617_s20, %s2146_s20   ;;  %s1522_s19 = sphi %s1615_s19, %s2145_s19   ;;  %s1518_s18 = sphi %s1613_s18, %s2142_s18  }
  0x13   : > { %2096 = sst [smem:[#allocation15_spill]] %s1522_s19  ;;  %s958_s8 = sadd.s32 4294967294, %s1570_s6  }
  0x14   : > { %2097 = sst [smem:[#allocation16_spill]] %s1554_s27  ;;  %p58_p0 = scmp.ne.s32.totalorder %s1546_s25, %s1542_s24 }
  0x15   : > { %2098 = sst [smem:[#allocation17_spill]] %s1558_s28  ;;  %p2072_p1 = scmp.eq.s32.totalorder %s1680_s7, 0 }
  0x16   : > { %2099 = sst [smem:[#allocation18_spill]] %s1680_s7  ;;  %p84_p2 = scmp.ne.s32.totalorder %s1534_s22, %s1530_s21 }
  0x17   : > { %p1689_p3 = por %p2072_p1, %p58_p0  ;;  %p170_p4 = scmp.ne.s32.totalorder %s1526_s20, %s1522_s19 }
  0x18   : > { %p1697_p5 = por %p84_p2, %p2072_p1  ;;  %p171_p6 = scmp.eq.s32.totalorder %s1680_s7, 3 }
  0x19   : > { %s2100_s10 = scalar_select %p1689_p3, 1, 0 }
  0x1a   : > { %s2101_s11 = scalar_select %p1697_p5, 1, 0 }
  0x1b   : > { %p176_p7 = scmp.ne.s32.totalorder %s1522_s19, %s1518_s18  ;;  %p177_p8 = scmp.eq.s32.totalorder %s958_s8, 3 }
  0x1c   : > { %2102 = sst [smem:[#allocation19_spill]] %s2101_s11  ;;  %p1704_p9 = por %p171_p6, %p170_p4 }
  0x1d   : > { %p959_p10 = scmp.ge.s32.totalorder %s1570_s6, 1  ;;  %p1709_p11 = por %p177_p8, %p176_p7 }
  0x1e   : > { %s2103_s12 = scalar_select %p1704_p9, 1, 0 }
  0x1f   : > { %s2105_s13 = scalar_select %p1709_p11, 1, 0 }
  0x20   : > { %2104 = sst [smem:[#allocation20_spill]] %s2103_s12  ;;  %p184_p12 = scmp.lt.s32.totalorder %s1570_s6, 5 }
  0x21   : > { %2106 = sst [smem:[#allocation21_spill]] %s2105_s13  ;;  %s1572_s15 = smov [#allocation8]  }
  0x22   : > { %p1714_p13 = pnand %p959_p10, %p184_p12  ;;  %s199_s16 = sshll.u32 %s1572_s15, 4  ;;  %s200_s16 = int_to_ptr.vmem [resolvable:$true] %s199_s16 }
  0x23   : > { %s2109_s3 = sld [smem:[#allocation25_spill]] }
  0x24   : > { %s2107_s14 = scalar_select %p1714_p13, 1, 0 }
  0x25   : > { %p1141_p0 = pneg %p1714_p13 }
  0x27   : > { %p1722_p2 = pnand %p1141_p0, %p2072_p1 }
  0x29   : > { %s1328_s8 = scalar_lea.hbm %s2109_s3, 1024  ;;  %p1330_p6 = pneg %p1722_p2 }
  0x2a   : > { %p1329_p4 = scmp.ne.s32.totalorder %s2109_s3, %s1328_s8  ;;  %p1335_p10 = scmp.lt.u32.totalorder %s1328_s8, %s2109_s3 }
  0x2c   : > { %p1331_p7 = pnand %p1330_p6, %p1329_p4 }
  0x2e   : > { %p1332_p8 = pneg %p1331_p7 }
  0x30   : > { %p1337_p12 = pnand %p1335_p10, %p1332_p8 }
  0x32   : > { %1340 = shalt.err (!%p1337_p12)
}
  0x33   : > { %s1341_s5 = scalar_lea.vmem %s200_s16, 1024  ;;  %p1349_p9 = scmp.lt.s32.totalorder %s200_s16, %s200_s16 }
  0x34   : > { %p1342_p0 = scmp.ne.s32.totalorder %s200_s16, %s1341_s5  ;;  %p1350_p5 = scmp.lt.s32.totalorder %s1341_s5, %s1341_s5 }
  0x36   : > { %p1344_p1 = pnand %p1342_p0, %p1330_p6  ;;  %p1351_p3 = por %p1350_p5, %p1349_p9 }
  0x38   : > { %p1345_p11 = pneg %p1344_p1 }
  0x3a   : > { %p1352_p13 = pnand %p1351_p3, %p1345_p11 }
  0x3c   : > { %1355 = shalt.err (!%p1352_p13)
}
  0x3d   : > { %s2077_s9 = smov 64   ;;  %s2078_s18 = smov 4  }
  0x3e   : > { %1144 = dma.hbm_to_vmem [thread:$0]  (!%p1722_p2), %s2109_s3, 1024, %s200_s16, [#allocation7], %s2077_s9, %s2077_s9, %s2078_s18  }
  0x3f   : > { %s33_s21 = sadd.s32 1, %s1562_s29  ;;  %s36_s24 = sadd.s32 1, %s1566_s30 }
  0x40   : > { %p34_p1 = scmp.ge.s32.totalorder %s33_s21, 2  ;;  %s45_s8 = sadd.s32 1, %s1550_s26 }
  0x41   : > { %p52_p3 = scmp.ne.s32.totalorder %s1550_s26, %s1546_s25  ;;  %p2089_p5 = scmp.eq.s32.totalorder %s1570_s6, 0 }
  0x42   : > { %s2158_s21 = smov (%p34_p1, %s33_s21), 0  ;;  %s2160_s24 = smov (!%p34_p1, %s36_s24), %s1566_s30 }
  0x43   : > { %2110 = sst [smem:[#allocation22_spill]] %s2158_s21  ;;  %s1755_s17 = ssub.s32 %s1562_s29, %s2158_s21 }
  0x44   : > { %p38_p9 = scmp.ge.s32.totalorder %s2160_s24, 2  ;;  %p69_p11 = scmp.eq.s32.totalorder %s1755_s17, 0 }
  0x45   : > { %p1761_p13 = por %p2089_p5, %p52_p3  ;;  %p2088_p2 = scmp.lt.s32.totalorder %s1570_s6, 4 }
  0x46   : > { %s2162_s24 = smov (%p38_p9, %s2160_s24), 0  ;;  %s216_s15 = sand.u32 1, %s1550_s26  }
  0x47   : > { %s1000_s5 = sshll.u32 %s1566_s30, 5  ;;  %s40_s13 = ssub.s32 %s1566_s30, %s2162_s24 }
  0x48   : > { %s42_s9 = sor.u32 %s1755_s17, %s40_s13  ;;  %p158_p4 = scmp.eq.s32.totalorder %s40_s13, 0 }
  0x49   : > { %p43_p6 = scmp.eq.s32.totalorder %s42_s9, 0  ;;  %s962_s18 = sshll.u32 %s216_s15, 7 }
  0x4a   : > { %s2112_s3 = sadd.s32 1, %s1526_s20  ;;  %s226_s28 = sadd.s32 %s1562_s29, %s1000_s5 }
  0x4b   : > { %s1776_s21 = scalar_select %p158_p4, %s1526_s20, %s2112_s3  }
  0x4c   : > { %s1779_s12 = scalar_select %p43_p6, %s1550_s26, %s45_s8  }
  0x4d   : > { %s965_s4 = sshll.u32 %s226_s28, 7  ;;  %s220_s2 = scalar_lea.vmem [#allocation3], %s962_s18 }
  0x4e   : > { %s229_s27 = sshll.u32 %s220_s2, 4  ;;  %s2113_s0 = sld [smem:[#allocation23_spill]]  ;;  %s1787_s27 = int_to_ptr.vmem [resolvable:$true] %s229_s27 }
  0x4f   : > { %p1793_p7 = pnand %p2088_p2, %p1761_p13  ;;  %s1797_s2 = scalar_lea.sflag [#allocation4], %s216_s15 }
  0x51   : > { %p1358_p10 = pneg %p1793_p7 }
  0x54   : > { %s1785_s7 = scalar_lea.hbm %s2113_s0, %s965_s4  ;;  %s1361_s11 = scalar_lea.hbm %s2113_s0, 8192 }
  0x55   : > { %s1356_s28 = scalar_lea.hbm %s1785_s7, 2048  ;;  %p1362_p1 = scmp.lt.u32.totalorder %s1785_s7, %s2113_s0 }
  0x56   : > { %p1357_p8 = scmp.ne.s32.totalorder %s1785_s7, %s1356_s28  ;;  %p1363_p3 = scmp.lt.u32.totalorder %s1361_s11, %s1356_s28 }
  0x57   : > { %p1365_p13 = scmp.lt.u32.totalorder %s1356_s28, %s1785_s7 }
  0x58   : > { %p1359_p12 = pnand %p1358_p10, %p1357_p8  ;;  %p1364_p9 = por %p1363_p3, %p1362_p1 }
  0x5a   : > { %p1360_p0 = pneg %p1359_p12  ;;  %p1366_p4 = por %p1365_p13, %p1364_p9 }
  0x5c   : > { %p1367_p6 = pnand %p1366_p4, %p1360_p0 }
  0x5e   : > { %1370 = shalt.err (!%p1367_p6)
}
  0x5f   : > { %s1371_s8 = scalar_lea.vmem %s1787_s27, 2048  ;;  %s1575_s16 = smov [#allocation3]  }
  0x60   : > { %p1372_p8 = scmp.ne.s32.totalorder %s1787_s27, %s1371_s8  ;;  %s1376_s15 = sshll.u32 %s1575_s16, 4  ;;  %s1377_s15 = int_to_ptr.vmem [resolvable:$false] %s1376_s15 }
  0x61   : > { %s1378_s5 = scalar_lea.vmem %s1377_s15, 4096  ;;  %p1379_p5 = scmp.lt.s32.totalorder %s1787_s27, %s1377_s15 }
  0x62   : > { %p1374_p12 = pnand %p1372_p8, %p1358_p10  ;;  %p1380_p1 = scmp.lt.s32.totalorder %s1378_s5, %s1371_s8 }
  0x64   : > { %p1375_p2 = pneg %p1374_p12  ;;  %p1381_p3 = por %p1380_p1, %p1379_p5 }
  0x66   : > { %p1382_p9 = pnand %p1381_p3, %p1375_p2 }
  0x68   : > { %1385 = shalt.err (!%p1382_p9)
}
  0x69   : > { %s1576_s13 = smov 256   ;;  %s1577_s28 = smov 128  }
  0x6a   : > { %s1578_s4 = smov 8   ;;  %s239_s19 = sand.u32 1, %s1570_s6  }
  0x6b   : > { %1148 = dma.hbm_to_vmem [thread:$0]  (!%p1793_p7), %s1785_s7, 2048, %s1787_s27, %s1797_s2, %s1576_s13, %s1577_s28, %s1578_s4  }
  0x6c   : > { %s71_s11 = sadd.s32 1, %s1538_s23  ;;  %p78_p5 = scmp.ne.s32.totalorder %s1538_s23, %s1534_s22 }
  0x6d   : > { %s1832_s9 = scalar_select %p69_p11, %s1538_s23, %s71_s11  }
  0x6e   : > { %p2115_p2 = scmp.eq.s32.totalorder %s1570_s6, 0  ;;  %s241_s18 = sand.u32 1, %s1538_s23  }
  0x6f   : > { %s1001_s8 = sshll.u32 %s1562_s29, 10  ;;  %s966_s16 = sshll.u32 %s241_s18, 6 }
  0x70   : > { %p80_p10 = por %p78_p5, %p2115_p2  ;;  %s1841_s0 = scalar_lea.hbm %s2064_s1, %s1001_s8 }
  0x71   : > { %p2116_p0 = scmp.lt.s32.totalorder %s1570_s6, 4  ;;  %s243_s7 = scalar_lea.vmem [#allocation6], %s966_s16 }
  0x72   : > { %s250_s17 = sshll.u32 %s243_s7, 4  ;;  %s1851_s3 = scalar_lea.sflag [#allocation7], %s239_s19  ;;  %s1849_s17 = int_to_ptr.vmem [resolvable:$true] %s250_s17 }
  0x73   : > { %p1845_p7 = pnand %p2116_p0, %p80_p10  ;;  %s1386_s2 = scalar_lea.hbm %s1841_s0, 1024 }
  0x74   : > { %p1387_p11 = scmp.ne.s32.totalorder %s1841_s0, %s1386_s2  ;;  %s1391_s4 = scalar_lea.hbm %s2064_s1, 2048 }
  0x75   : > { %p1388_p13 = pneg %p1845_p7  ;;  %p1392_p8 = scmp.lt.u32.totalorder %s1841_s0, %s2064_s1 }
  0x76   : > { %p1393_p12 = scmp.lt.u32.totalorder %s1391_s4, %s1386_s2  ;;  %p1395_p3 = scmp.lt.u32.totalorder %s1386_s2, %s1841_s0 }
  0x77   : > { %p1389_p4 = pnand %p1388_p13, %p1387_p11 }
  0x78   : > { %p1394_p1 = por %p1393_p12, %p1392_p8 }
  0x79   : > { %p1390_p6 = pneg %p1389_p4 }
  0x7a   : > { %p1396_p9 = por %p1395_p3, %p1394_p1 }
  0x7c   : > { %p1397_p5 = pnand %p1396_p9, %p1390_p6 }
  0x7e   : > { %1400 = shalt.err (!%p1397_p5)
}
  0x7f   : > { %s1401_s19 = scalar_lea.vmem %s1849_s17, 1024  ;;  %s1579_s8 = smov [#allocation6]  }
  0x80   : > { %p1402_p2 = scmp.ne.s32.totalorder %s1849_s17, %s1401_s19  ;;  %s1406_s16 = sshll.u32 %s1579_s8, 4  ;;  %s1407_s16 = int_to_ptr.vmem [resolvable:$false] %s1406_s16 }
  0x81   : > { %s1408_s15 = scalar_lea.vmem %s1407_s16, 2048  ;;  %p1409_p11 = scmp.lt.s32.totalorder %s1849_s17, %s1407_s16 }
  0x82   : > { %p1404_p10 = pnand %p1402_p2, %p1388_p13  ;;  %p1410_p4 = scmp.lt.s32.totalorder %s1408_s15, %s1401_s19 }
  0x84   : > { %p1405_p0 = pneg %p1404_p10  ;;  %p1411_p8 = por %p1410_p4, %p1409_p11 }
  0x86   : > { %p1412_p12 = pnand %p1411_p8, %p1405_p0 }
  0x88   : > { %1415 = shalt.err (!%p1412_p12)
}
  0x89   : > { %s2118_s5 = smov 4   ;;  %s2119_s7 = smov 64  }
  0x8a   : > { %1151 = dma.hbm_to_vmem [thread:$0]  (!%p1845_p7), %s1841_s0, 1024, %s1849_s17, %s1851_s3, %s2119_s7, %s2119_s7, %s2118_s5  }
  0x8b   : > { %p2120_p13 = scmp.ne.s32.totalorder %s2107_s14, 0 }
  0x8c   : > { %s264_s2 = sand.u32 (!%p2120_p13), 1, %s1546_s25   ;;  %p2121_p6 = scmp.ne.s32.totalorder (!%p2120_p13), %s2100_s10, 0 }
  0x8d   : > { %262 = sbr.rel (%p2120_p13) target bundleno = 730 (0x2da), region = 40  ;;  %s970_s13 = sshll.u32 (!%p2120_p13), %s264_s2, 7 }
  0x8e   : > { %s265_s28 = scalar_lea.sflag (!%p2120_p13), [#allocation4], %s264_s2  ;;  %s1885_s4 = scalar_lea.vmem (!%p2120_p13), [#allocation3], %s970_s13 }
  0x94   : > { %1501 = dma.done.wait (%p2121_p6), %s265_s28, 2048  }
  0x95   : > { %1503 = vsyncadd (%p2121_p6), %s265_s28, 4294965248  ;;  %s2122_s27 = sld [smem:[#allocation18_spill]]  ;;  %s2123_s11 = sld [smem:[#allocation19_spill]] }
  0x96   : > { %s275_s0 = sand.u32 1, %s1534_s22  }
  0x97   : > { %s971_s17 = sshll.u32 %s275_s0, 6 }
  0x98   : > { %s1893_s3 = scalar_lea.vmem [#allocation6], %s971_s17 }
  0x9b   : > { %s273_s18 = sand.u32 1, %s2122_s27   ;;  %p2124_p7 = scmp.ne.s32.totalorder %s2123_s11, 0 }
  0x9c   : > { %s274_s14 = scalar_lea.sflag [#allocation7], %s273_s18 }
  0x9d   : > { %1505 = dma.done.wait (%p2124_p7), %s274_s14, 1024  }
  0x9e   : > { %1507 = vsyncadd (%p2124_p7), %s274_s14, 4294966272  ;;  %p2125_p1 = scmp.eq.s32.totalorder %s2122_s27, 0 }
  0xa0   : > { %1509 = dma.done.wait (%p2125_p1), [#allocation7], 1024   ;;  %p2126_p3 = pmov %p2125_p1 }
  0xa1   : > { %s2127_s10 = sld [smem:[#allocation15_spill]]  ;;  %v1280_v0 = vld [vmem:[%s1893_s3] sm:$0xff]   ;;  %v1281_v1 = vld [vmem:[%s1893_s3 + $0x8] sm:$0xff]   ;;  %v1282_v2 = vld [vmem:[%s1893_s3 + $0x10] sm:$0xff]   ;;  %s2128_s15 = sld [smem:[#allocation16_spill]] }
  0xa2   : > { %1511 = vsyncadd (%p2126_p3), [#allocation7], 4294966272  ;;  %1035 = vmatprep.subr.bf16.mxu0 %v1280_v0  ;;  %1099 = vmatprep.subr.bf16.mxu1 %v1280_v0  ;;  %v1283_v3 = vld [vmem:[%s1893_s3 + $0x18] sm:$0xff]   ;;  %v317_v4 = vld [vmem:[%s1885_s4] sm:$0xff] }
  0xa3   : > { %1036 = vmatpush3.bf16.msra.mxu0 %v1280_v0  ;;  %1107 = vmatpush3.bf16.msra.mxu1 %v1280_v0  ;;  %v318_v5 = vld [vmem:[%s1885_s4 + $0x8] sm:$0xff]  ;;  %v325_v6 = vld [vmem:[%s1885_s4 + $0x40] sm:$0xff]  ;;  %v1286_v12 = vld [vmem:[%s1893_s3 + $0x30] sm:$0xff]  }
  0xa4   : > { %1037 = vmatprep.subr.bf16.mxu0 %v1281_v1  ;;  %1100 = vmatprep.subr.bf16.mxu1 %v1281_v1  ;;  %v333_v7 = vpack.c.bf16 %v318_v5, %v317_v4  ;;  %v326_v8 = vld [vmem:[%s1885_s4 + $0x48] sm:$0xff]  ;;  %v1284_v10 = vld [vmem:[%s1893_s3 + $0x20] sm:$0xff]   ;;  %v1287_v13 = vld [vmem:[%s1893_s3 + $0x38] sm:$0xff]  }
  0xa5   : > { %v337_v9 = vpack.c.bf16 %v326_v8, %v325_v6  ;;  %v1285_v11 = vld [vmem:[%s1893_s3 + $0x28] sm:$0xff]   ;;  %v319_v14 = vld [vmem:[%s1885_s4 + $0x10] sm:$0xff]  ;;  %v320_v15 = vld [vmem:[%s1885_s4 + $0x18] sm:$0xff] }
  0xa6   : > { %1051 = vmatprep.mubr.bf16.mxu0 %v333_v7  ;;  %v327_v16 = vld [vmem:[%s1885_s4 + $0x50] sm:$0xff]  ;;  %v328_v17 = vld [vmem:[%s1885_s4 + $0x58] sm:$0xff]  ;;  %v321_v18 = vld [vmem:[%s1885_s4 + $0x20] sm:$0xff]  ;;  %v334_v22 = vpack.c.bf16 %v320_v15, %v319_v14 }
  0xa7   : > { %s310_s19 = sand.u32 1, %s2127_s10   ;;  %1038 = vmatpush3.bf16.msra.mxu0 %v1281_v1  ;;  %1108 = vmatpush3.bf16.msra.mxu1 %v1281_v1  ;;  %v322_v19 = vld [vmem:[%s1885_s4 + $0x28] sm:$0xff]  ;;  %v329_v20 = vld [vmem:[%s1885_s4 + $0x60] sm:$0xff]  ;;  %v338_v23 = vpack.c.bf16 %v328_v17, %v327_v16  ;;  %v323_v26 = vld [vmem:[%s1885_s4 + $0x30] sm:$0xff]  ;;  %p982_p9 = scmp.ne.s32.totalorder %s2128_s15, 0 }
  0xa8   : > { %s1906_s8 = sshll.u32 %s310_s19, 7  ;;  %1039 = vmatprep.subr.bf16.mxu0 %v1282_v2  ;;  %1101 = vmatprep.subr.bf16.mxu1 %v1282_v2  ;;  %v330_v21 = vld [vmem:[%s1885_s4 + $0x68] sm:$0xff]  ;;  %v335_v24 = vpack.c.bf16 %v322_v19, %v321_v18  ;;  %v324_v27 = vld [vmem:[%s1885_s4 + $0x38] sm:$0xff]  ;;  %v331_v28 = vld [vmem:[%s1885_s4 + $0x70] sm:$0xff] }
  0xa9   : > { %1059 = vmatprep.mubr.bf16.mxu1 %v337_v9  ;;  %v339_v25 = vpack.c.bf16 %v330_v21, %v329_v20  ;;  %v332_v29 = vld [vmem:[%s1885_s4 + $0x78] sm:$0xff]  ;;  %v336_v30 = vpack.c.bf16 %v324_v27, %v323_v26  ;;  %s1941_s16 = scalar_lea.vmem [#allocation9], %s1906_s8 }
  0xaa   : > { %v340_v31 = vpack.c.bf16 %v332_v29, %v331_v28 }
  0xab   : > { %1040 = vmatpush3.bf16.msra.mxu0 %v1282_v2  ;;  %1109 = vmatpush3.bf16.msra.mxu1 %v1282_v2 }
  0xac   : > { %1041 = vmatprep.subr.bf16.mxu0 %v1283_v3  ;;  %1102 = vmatprep.subr.bf16.mxu1 %v1283_v3 }
  0xaf   : > { %1042 = vmatpush3.bf16.msra.mxu0 %v1283_v3  ;;  %1110 = vmatpush3.bf16.msra.mxu1 %v1283_v3 }
  0xb0   : > { %1043 = vmatprep.subr.bf16.mxu0 %v1284_v10  ;;  %1103 = vmatprep.subr.bf16.mxu1 %v1284_v10 }
  0xb3   : > { %1044 = vmatpush3.bf16.msra.mxu0 %v1284_v10  ;;  %1111 = vmatpush3.bf16.msra.mxu1 %v1284_v10 }
  0xb4   : > { %1045 = vmatprep.subr.bf16.mxu0 %v1285_v11  ;;  %1104 = vmatprep.subr.bf16.mxu1 %v1285_v11 }
  0xb7   : > { %1046 = vmatpush3.bf16.msra.mxu0 %v1285_v11  ;;  %1112 = vmatpush3.bf16.msra.mxu1 %v1285_v11 }
  0xb8   : > { %1047 = vmatprep.subr.bf16.mxu0 %v1286_v12  ;;  %1105 = vmatprep.subr.bf16.mxu1 %v1286_v12 }
  0xbb   : > { %1048 = vmatpush3.bf16.msra.mxu0 %v1286_v12  ;;  %1113 = vmatpush3.bf16.msra.mxu1 %v1286_v12 }
  0xbc   : > { %1049 = vmatprep.subr.bf16.mxu0 %v1287_v13  ;;  %1106 = vmatprep.subr.bf16.mxu1 %v1287_v13 }
  0xbf   : > { %1050 = vmatpush3.bf16.msra.mxu0 %v1287_v13  ;;  %1114 = vmatpush3.bf16.msra.mxu1 %v1287_v13 }
  0xc2   : > { %1052 = vmatmul.mubr.bf16.vlgmr.msra.gmra.mrb[0].mxu0 %v334_v22  ;;  %1060 = vmatmul.mubr.bf16.vlgmr.msra.gmra.mrb[0].mxu1 %v338_v23 }
  0xc3   : > { %1055 = vmatprep.mubr.bf16.mxu0 %v335_v24  ;;  %1063 = vmatprep.mubr.bf16.mxu1 %v339_v25 }
  0xca   : > { %1056 = vmatmul.mubr.bf16.gmra.mrb[4].mxu0 %v336_v30  ;;  %1064 = vmatmul.mubr.bf16.gmra.mrb[4].mxu1 %v340_v31 }
 0x195   : > { %v1053_v32 = vpop.f32.mrb[0].mxu0  ;;  %v1932_v33 = vpop.f32.mrb[0].mxu1 }
 0x196   : > { %v439_v34 = vpop.f32.mrb[1].mxu0  ;;  %v471_v35 = vpop.f32.mrb[1].mxu1  ;;  %508 = vst [vmem:[#allocation2 + $0x10] sm:$0xff] (!%p982_p9), %v1053_v32  ;;  %516 = vst [vmem:[#allocation2 + $0x50] sm:$0xff] (!%p982_p9), %v1932_v33 }
 0x197   : > { %v1054_v36 = vpop.f32.mrb[2].mxu0  ;;  %v1062_v37 = vpop.f32.mrb[2].mxu1  ;;  %506 = vst [vmem:[#allocation2] sm:$0xff] (!%p982_p9), %v439_v34  ;;  %514 = vst [vmem:[#allocation2 + $0x40] sm:$0xff] (!%p982_p9), %v471_v35 }
 0x198   : > { %v442_v38 = vpop.f32.mrb[3].mxu0  ;;  %v474_v39 = vpop.f32.mrb[3].mxu1  ;;  %509 = vst [vmem:[#allocation2 + $0x18] sm:$0xff] (!%p982_p9), %v1054_v36  ;;  %517 = vst [vmem:[#allocation2 + $0x58] sm:$0xff] (!%p982_p9), %v1062_v37 }
 0x199   : > { %507 = vst [vmem:[#allocation2 + $0x8] sm:$0xff] (!%p982_p9), %v442_v38  ;;  %515 = vst [vmem:[#allocation2 + $0x48] sm:$0xff] (!%p982_p9), %v474_v39 }
 0x19a   : > { %505 = sbr.rel (%p982_p9) target bundleno = 418 (0x1a2), region = 56 }
 0x19d   : > { %v1057_v40 = vpop.f32.mrb[4].mxu0  ;;  %v1934_v41 = vpop.f32.mrb[4].mxu1 }
 0x19e   : > { %v455_v42 = vpop.f32.mrb[5].mxu0  ;;  %v1936_v43 = vpop.f32.mrb[5].mxu1  ;;  %512 = vst [vmem:[#allocation2 + $0x30] sm:$0xff] (!%p982_p9), %v1057_v40  ;;  %520 = vst [vmem:[#allocation2 + $0x70] sm:$0xff] (!%p982_p9), %v1934_v41 }
 0x19f   : > { %v1058_v44 = vpop.f32.mrb[6].mxu0  ;;  %v1938_v45 = vpop.f32.mrb[6].mxu1  ;;  %510 = vst [vmem:[#allocation2 + $0x20] sm:$0xff] (!%p982_p9), %v455_v42  ;;  %518 = vst [vmem:[#allocation2 + $0x60] sm:$0xff] (!%p982_p9), %v1936_v43 }
 0x1a0   : > { %v458_v46 = vpop.f32.mrb[7].mxu0  ;;  %v490_v47 = vpop.f32.mrb[7].mxu1  ;;  %513 = vst [vmem:[#allocation2 + $0x38] sm:$0xff] (!%p982_p9), %v1058_v44  ;;  %521 = vst [vmem:[#allocation2 + $0x78] sm:$0xff] (!%p982_p9), %v1938_v45 }
 0x1a1   : > { %511 = vst [vmem:[#allocation2 + $0x28] sm:$0xff] %v458_v46  ;;  %519 = vst [vmem:[#allocation2 + $0x68] sm:$0xff] %v490_v47 }
 0x1a2 PF: > { %s2129_s5 = sld [smem:[#allocation16_spill]] }
 0x1a8   : > { %p983_p5 = scmp.le.s32.totalorder %s2129_s5, 0 }
 0x1a9   : > { %v526_v48 = vld [vmem:[#allocation2] sm:$0xff] (!%p983_p5)  ;;  %v527_v49 = vld [vmem:[#allocation2 + $0x8] sm:$0xff] (!%p983_p5)  ;;  %v528_v50 = vld [vmem:[#allocation2 + $0x10] sm:$0xff] (!%p983_p5) }
 0x1aa   : > { %525 = sbr.rel (%p983_p5) target bundleno = 436 (0x1b4), region = 60  ;;  %v542_v51 = vadd.f32 (!%p983_p5), %v526_v48, %v439_v34  ;;  %v543_v52 = vadd.f32 (!%p983_p5), %v527_v49, %v442_v38  ;;  %v544_v53 = vadd.f32 (!%p983_p5), %v1053_v32, %v528_v50  ;;  %v529_v54 = vld [vmem:[#allocation2 + $0x18] sm:$0xff] (!%p983_p5)  ;;  %v530_v55 = vld [vmem:[#allocation2 + $0x20] sm:$0xff] (!%p983_p5)  ;;  %v531_v56 = vld [vmem:[#allocation2 + $0x28] sm:$0xff] (!%p983_p5) }
 0x1ab   : > { %v545_v57 = vadd.f32 (!%p983_p5), %v1054_v36, %v529_v54  ;;  %v546_v58 = vadd.f32 (!%p983_p5), %v530_v55, %v455_v42  ;;  %v547_v59 = vadd.f32 (!%p983_p5), %v531_v56, %v458_v46  ;;  %v532_v60 = vld [vmem:[#allocation2 + $0x30] sm:$0xff] (!%p983_p5)  ;;  %v533_v61 = vld [vmem:[#allocation2 + $0x38] sm:$0xff] (!%p983_p5)  ;;  %v534_v62 = vld [vmem:[#allocation2 + $0x40] sm:$0xff] (!%p983_p5) }
 0x1ac   : > { %558 = vst [vmem:[#allocation2] sm:$0xff] (!%p983_p5), %v542_v51  ;;  %559 = vst [vmem:[#allocation2 + $0x8] sm:$0xff] (!%p983_p5), %v543_v52  ;;  %v548_v63 = vadd.f32 (!%p983_p5), %v1057_v40, %v532_v60  ;;  %v549_v0 = vadd.f32 (!%p983_p5), %v1058_v44, %v533_v61  ;;  %v550_v1 = vadd.f32 (!%p983_p5), %v534_v62, %v471_v35  ;;  %v535_v2 = vld [vmem:[#allocation2 + $0x48] sm:$0xff] (!%p983_p5)  ;;  %v536_v3 = vld [vmem:[#allocation2 + $0x50] sm:$0xff] (!%p983_p5) }
 0x1ad   : > { %560 = vst [vmem:[#allocation2 + $0x10] sm:$0xff] (!%p983_p5), %v544_v53  ;;  %v537_v4 = vld [vmem:[#allocation2 + $0x58] sm:$0xff] (!%p983_p5)  ;;  %561 = vst [vmem:[#allocation2 + $0x18] sm:$0xff] (!%p983_p5), %v545_v57  ;;  %v551_v5 = vadd.f32 (!%p983_p5), %v535_v2, %v474_v39  ;;  %v552_v6 = vadd.f32 (!%p983_p5), %v1932_v33, %v536_v3  ;;  %v538_v8 = vld [vmem:[#allocation2 + $0x60] sm:$0xff] (!%p983_p5) }
 0x1ae   : > { %562 = vst [vmem:[#allocation2 + $0x20] sm:$0xff] (!%p983_p5), %v546_v58  ;;  %563 = vst [vmem:[#allocation2 + $0x28] sm:$0xff] (!%p983_p5), %v547_v59  ;;  %v553_v7 = vadd.f32 (!%p983_p5), %v1062_v37, %v537_v4  ;;  %v539_v9 = vld [vmem:[#allocation2 + $0x68] sm:$0xff] (!%p983_p5)  ;;  %v540_v10 = vld [vmem:[#allocation2 + $0x70] sm:$0xff] (!%p983_p5)  ;;  %v554_v11 = vadd.f32 (!%p983_p5), %v538_v8, %v1936_v43 }
 0x1af   : > { %564 = vst [vmem:[#allocation2 + $0x30] sm:$0xff] (!%p983_p5), %v548_v63  ;;  %565 = vst [vmem:[#allocation2 + $0x38] sm:$0xff] (!%p983_p5), %v549_v0  ;;  %v555_v12 = vadd.f32 (!%p983_p5), %v539_v9, %v490_v47  ;;  %v556_v13 = vadd.f32 (!%p983_p5), %v1934_v41, %v540_v10  ;;  %v541_v14 = vld [vmem:[#allocation2 + $0x78] sm:$0xff] (!%p983_p5) }
 0x1b0   : > { %566 = vst [vmem:[#allocation2 + $0x40] sm:$0xff] (!%p983_p5), %v550_v1  ;;  %567 = vst [vmem:[#allocation2 + $0x48] sm:$0xff] (!%p983_p5), %v551_v5  ;;  %v557_v15 = vadd.f32 (!%p983_p5), %v1938_v45, %v541_v14 }
 0x1b1   : > { %568 = vst [vmem:[#allocation2 + $0x50] sm:$0xff] %v552_v6  ;;  %569 = vst [vmem:[#allocation2 + $0x58] sm:$0xff] %v553_v7 }
 0x1b2   : > { %570 = vst [vmem:[#allocation2 + $0x60] sm:$0xff] %v554_v11  ;;  %571 = vst [vmem:[#allocation2 + $0x68] sm:$0xff] %v555_v12 }
 0x1b3   : > { %572 = vst [vmem:[#allocation2 + $0x70] sm:$0xff] %v556_v13  ;;  %573 = vst [vmem:[#allocation2 + $0x78] sm:$0xff] %v557_v15 }
 0x1b4 PF: > { %s2130_s7 = sld [smem:[#allocation16_spill]] }
 0x1ba   : > { %p984_p2 = scmp.ne.s32.totalorder %s2130_s7, 1 }
 0x1bb   : > { %v1288_v16 = vld [vmem:[#allocation8] sm:$0xff] (!%p984_p2)   ;;  %v1289_v17 = vld [vmem:[#allocation8 + $0x8] sm:$0xff] (!%p984_p2)   ;;  %v1290_v18 = vld [vmem:[#allocation8 + $0x10] sm:$0xff] (!%p984_p2)   ;;  %s2131_s28 = sld [smem:[#allocation24_spill]] (!%p984_p2)  ;;  %s2132_s11 = sld [smem:[#allocation26_spill]] (!%p984_p2) }
 0x1bc   : > { %577 = sbr.rel (%p984_p2) target bundleno = 702 (0x2be), region = 64  ;;  %1067 = vmatprep.subr.bf16.mxu0 (!%p984_p2), %v1288_v16  ;;  %1115 = vmatprep.subr.bf16.mxu1 (!%p984_p2), %v1288_v16  ;;  %v1291_v19 = vld [vmem:[#allocation8 + $0x18] sm:$0xff] (!%p984_p2)   ;;  %v578_v20 = vld [vmem:[#allocation2] sm:$0xff] (!%p984_p2)  ;;  %v579_v21 = vld [vmem:[#allocation2 + $0x8] sm:$0xff] (!%p984_p2) }
 0x1bd   : > { %1068 = vmatpush3.bf16.msra.mxu0 (!%p984_p2), %v1288_v16  ;;  %1123 = vmatpush3.bf16.msra.mxu1 (!%p984_p2), %v1288_v16  ;;  %v586_v25 = vld [vmem:[#allocation2 + $0x40] sm:$0xff] (!%p984_p2)  ;;  %v587_v26 = vld [vmem:[#allocation2 + $0x48] sm:$0xff] (!%p984_p2)  ;;  %v580_v27 = vld [vmem:[#allocation2 + $0x10] sm:$0xff] (!%p984_p2) }
 0x1be   : > { %1069 = vmatprep.subr.bf16.mxu0 (!%p984_p2), %v1289_v17  ;;  %1116 = vmatprep.subr.bf16.mxu1 (!%p984_p2), %v1289_v17  ;;  %v581_v30 = vld [vmem:[#allocation2 + $0x18] sm:$0xff] (!%p984_p2)  ;;  %v588_v31 = vld [vmem:[#allocation2 + $0x50] sm:$0xff] (!%p984_p2)  ;;  %v1292_v34 = vld [vmem:[#allocation8 + $0x20] sm:$0xff] (!%p984_p2)  }
 0x1bf   : > { %v589_v33 = vld [vmem:[#allocation2 + $0x58] sm:$0xff] (!%p984_p2)  ;;  %v582_v36 = vld [vmem:[#allocation2 + $0x20] sm:$0xff] (!%p984_p2)  ;;  %v583_v38 = vld [vmem:[#allocation2 + $0x28] sm:$0xff] (!%p984_p2) }
 0x1c0   : > { %v590_v40 = vld [vmem:[#allocation2 + $0x60] sm:$0xff] (!%p984_p2)  ;;  %v591_v42 = vld [vmem:[#allocation2 + $0x68] sm:$0xff] (!%p984_p2)  ;;  %v584_v45 = vld [vmem:[#allocation2 + $0x30] sm:$0xff] (!%p984_p2) }
 0x1c1   : > { %1070 = vmatpush3.bf16.msra.mxu0 (!%p984_p2), %v1289_v17  ;;  %1124 = vmatpush3.bf16.msra.mxu1 (!%p984_p2), %v1289_v17  ;;  %v985_v22 = vld [vmem:[%s2131_s28] ss:$0 sm:$0xff] (!%p984_p2)  ;;  %v1293_v43 = vld [vmem:[#allocation8 + $0x28] sm:$0xff] (!%p984_p2)   ;;  %v585_v47 = vld [vmem:[#allocation2 + $0x38] sm:$0xff] (!%p984_p2) }
 0x1c2   : > { %1071 = vmatprep.subr.bf16.mxu0 (!%p984_p2), %v1290_v18  ;;  %1117 = vmatprep.subr.bf16.mxu1 (!%p984_p2), %v1290_v18  ;;  %v601_v23 = vadd.f32 (!%p984_p2), %v985_v22, %v578_v20  ;;  %v602_v24 = vadd.f32 (!%p984_p2), %v985_v22, %v579_v21  ;;  %v609_v28 = vadd.f32 (!%p984_p2), %v985_v22, %v586_v25  ;;  %v592_v49 = vld [vmem:[#allocation2 + $0x70] sm:$0xff] (!%p984_p2)  ;;  %v593_v51 = vld [vmem:[#allocation2 + $0x78] sm:$0xff] (!%p984_p2)  ;;  %v986_v17 = vld [vmem:[%s2132_s11] ss:$0 sm:$0xff] (!%p984_p2) }
 0x1c3   : > { %v610_v29 = vadd.f32 %v985_v22, %v587_v26  ;;  %v603_v32 = vadd.f32 %v985_v22, %v580_v27  ;;  %v604_v35 = vadd.f32 %v985_v22, %v581_v30  ;;  %v611_v37 = vadd.f32 %v985_v22, %v588_v31  ;;  %v1294_v52 = vld [vmem:[#allocation8 + $0x30] sm:$0xff]   ;;  %v1295_v61 = vld [vmem:[#allocation8 + $0x38] sm:$0xff]  }
 0x1c4   : > { %1296 = vtanh.f32 %v601_v23  ;;  %v612_v39 = vadd.f32 %v985_v22, %v589_v33  ;;  %v605_v41 = vadd.f32 %v985_v22, %v582_v36  ;;  %v606_v44 = vadd.f32 %v985_v22, %v583_v38 }
 0x1c5   : > { %1072 = vmatpush3.bf16.msra.mxu0 %v1290_v18  ;;  %1125 = vmatpush3.bf16.msra.mxu1 %v1290_v18  ;;  %1298 = vtanh.f32 %v602_v24  ;;  %v613_v46 = vadd.f32 %v985_v22, %v590_v40  ;;  %v614_v48 = vadd.f32 %v985_v22, %v591_v42  ;;  %v607_v50 = vadd.f32 %v985_v22, %v584_v45 }
 0x1c6   : > { %1073 = vmatprep.subr.bf16.mxu0 %v1291_v19  ;;  %1118 = vmatprep.subr.bf16.mxu1 %v1291_v19  ;;  %1300 = vtanh.f32 %v609_v28  ;;  %v608_v53 = vadd.f32 %v985_v22, %v585_v47  ;;  %v615_v55 = vadd.f32 %v985_v22, %v592_v49  ;;  %v616_v57 = vadd.f32 %v985_v22, %v593_v51 }
 0x1c7   : > { %1302 = vtanh.f32 %v610_v29 }
 0x1c8   : > { %1304 = vtanh.f32 %v603_v32 }
 0x1c9   : > { %1074 = vmatpush3.bf16.msra.mxu0 %v1291_v19  ;;  %1126 = vmatpush3.bf16.msra.mxu1 %v1291_v19  ;;  %1306 = vtanh.f32 %v604_v35 }
 0x1ca   : > { %1075 = vmatprep.subr.bf16.mxu0 %v1292_v34  ;;  %1119 = vmatprep.subr.bf16.mxu1 %v1292_v34  ;;  %1308 = vtanh.f32 %v611_v37 }
 0x1cb   : > { %1310 = vtanh.f32 %v612_v39 }
 0x1cc   : > { %1312 = vtanh.f32 %v605_v41 }
 0x1cd   : > { %1076 = vmatpush3.bf16.msra.mxu0 %v1292_v34  ;;  %1127 = vmatpush3.bf16.msra.mxu1 %v1292_v34  ;;  %1314 = vtanh.f32 %v606_v44 }
 0x1ce   : > { %1077 = vmatprep.subr.bf16.mxu0 %v1293_v43  ;;  %1120 = vmatprep.subr.bf16.mxu1 %v1293_v43  ;;  %v1297_v54 = vpop.eup %1296  ;;  %1316 = vtanh.f32 %v613_v46 }
 0x1cf   : > { %v1299_v56 = vpop.eup %1298  ;;  %1318 = vtanh.f32 %v614_v48 }
 0x1d0   : > { %v1301_v58 = vpop.eup %1300  ;;  %v633_v59 = vpack.c.bf16 %v1299_v56, %v1297_v54  ;;  %1320 = vtanh.f32 %v607_v50 }
 0x1d1   : > { %1078 = vmatpush3.bf16.msra.mxu0 %v1293_v43  ;;  %1128 = vmatpush3.bf16.msra.mxu1 %v1293_v43  ;;  %v1303_v60 = vpop.eup %1302  ;;  %1322 = vtanh.f32 %v608_v53 }
 0x1d2   : > { %1079 = vmatprep.subr.bf16.mxu0 %v1294_v52  ;;  %1121 = vmatprep.subr.bf16.mxu1 %v1294_v52  ;;  %v1305_v62 = vpop.eup %1304  ;;  %v637_v63 = vpack.c.bf16 %v1303_v60, %v1301_v58  ;;  %1324 = vtanh.f32 %v615_v55 }
 0x1d3   : > { %1083 = vmatprep.mubr.bf16.mxu0 %v633_v59  ;;  %v1307_v0 = vpop.eup %1306  ;;  %1326 = vtanh.f32 %v616_v57 }
 0x1d4   : > { %v1309_v1 = vpop.eup %1308  ;;  %1091 = vmatprep.mubr.bf16.mxu1 %v637_v63  ;;  %v634_v5 = vpack.c.bf16 %v1307_v0, %v1305_v62 }
 0x1d5   : > { %1080 = vmatpush3.bf16.msra.mxu0 %v1294_v52  ;;  %1129 = vmatpush3.bf16.msra.mxu1 %v1294_v52  ;;  %v1311_v2 = vpop.eup %1310 }
 0x1d6   : > { %1081 = vmatprep.subr.bf16.mxu0 %v1295_v61  ;;  %1122 = vmatprep.subr.bf16.mxu1 %v1295_v61  ;;  %v1313_v3 = vpop.eup %1312  ;;  %v638_v6 = vpack.c.bf16 %v1311_v2, %v1309_v1 }
 0x1d7   : > { %v1315_v4 = vpop.eup %1314 }
 0x1d8   : > { %v1317_v7 = vpop.eup %1316  ;;  %v635_v8 = vpack.c.bf16 %v1315_v4, %v1313_v3 }
 0x1d9   : > { %1082 = vmatpush3.bf16.msra.mxu0 %v1295_v61  ;;  %1130 = vmatpush3.bf16.msra.mxu1 %v1295_v61  ;;  %v1319_v9 = vpop.eup %1318 }
 0x1da   : > { %v1321_v10 = vpop.eup %1320  ;;  %v639_v11 = vpack.c.bf16 %v1319_v9, %v1317_v7 }
 0x1db   : > { %v1323_v12 = vpop.eup %1322 }
 0x1dc   : > { %1084 = vmatmul.mubr.bf16.vlgmr.msra.gmra.mrb[0].mxu0 %v634_v5  ;;  %1092 = vmatmul.mubr.bf16.vlgmr.msra.gmra.mrb[0].mxu1 %v638_v6  ;;  %v1325_v13 = vpop.eup %1324  ;;  %v636_v15 = vpack.c.bf16 %v1323_v12, %v1321_v10 }
 0x1dd   : > { %1087 = vmatprep.mubr.bf16.mxu0 %v635_v8  ;;  %1095 = vmatprep.mubr.bf16.mxu1 %v639_v11  ;;  %v1327_v14 = vpop.eup %1326 }
 0x1de   : > { %v640_v16 = vpack.c.bf16 %v1327_v14, %v1325_v13 }
 0x1e4   : > { %1088 = vmatmul.mubr.bf16.gmra.mrb[4].mxu0 %v636_v15  ;;  %1096 = vmatmul.mubr.bf16.gmra.mrb[4].mxu1 %v640_v16 }
 0x2af   : > { %v1085_v18 = vpop.f32.mrb[0].mxu0  ;;  %v1093_v19 = vpop.f32.mrb[0].mxu1 }
 0x2b0   : > { %v755_v20 = vadd.f32 %v1085_v18, %v986_v17  ;;  %v787_v21 = vadd.f32 %v1093_v19, %v986_v17  ;;  %v746_v22 = vpop.f32.mrb[1].mxu0  ;;  %v778_v23 = vpop.f32.mrb[1].mxu1 }
 0x2b1   : > { %v747_v24 = vadd.f32 %v986_v17, %v746_v22  ;;  %v779_v25 = vadd.f32 %v986_v17, %v778_v23  ;;  %v1086_v26 = vpop.f32.mrb[2].mxu0  ;;  %v1094_v27 = vpop.f32.mrb[2].mxu1 }
 0x2b2   : > { %811 = vst [vmem:[%s1941_s16 + $0x10] sm:$0xff] %v755_v20  ;;  %819 = vst [vmem:[%s1941_s16 + $0x50] sm:$0xff] %v787_v21  ;;  %v758_v28 = vadd.f32 %v1086_v26, %v986_v17  ;;  %v790_v29 = vadd.f32 %v1094_v27, %v986_v17  ;;  %v749_v30 = vpop.f32.mrb[3].mxu0  ;;  %v781_v31 = vpop.f32.mrb[3].mxu1 }
 0x2b3   : > { %809 = vst [vmem:[%s1941_s16] sm:$0xff] %v747_v24  ;;  %817 = vst [vmem:[%s1941_s16 + $0x40] sm:$0xff] %v779_v25  ;;  %v750_v32 = vadd.f32 %v986_v17, %v749_v30  ;;  %v782_v33 = vadd.f32 %v986_v17, %v781_v31 }
 0x2b4   : > { %812 = vst [vmem:[%s1941_s16 + $0x18] sm:$0xff] %v758_v28  ;;  %820 = vst [vmem:[%s1941_s16 + $0x58] sm:$0xff] %v790_v29 }
 0x2b5   : > { %810 = vst [vmem:[%s1941_s16 + $0x8] sm:$0xff] %v750_v32  ;;  %818 = vst [vmem:[%s1941_s16 + $0x48] sm:$0xff] %v782_v33 }
 0x2b7   : > { %v1089_v34 = vpop.f32.mrb[4].mxu0  ;;  %v1097_v35 = vpop.f32.mrb[4].mxu1 }
 0x2b8   : > { %v771_v36 = vadd.f32 %v1089_v34, %v986_v17  ;;  %v803_v37 = vadd.f32 %v1097_v35, %v986_v17  ;;  %v762_v38 = vpop.f32.mrb[5].mxu0  ;;  %v794_v39 = vpop.f32.mrb[5].mxu1 }
 0x2b9   : > { %v763_v40 = vadd.f32 %v986_v17, %v762_v38  ;;  %v795_v41 = vadd.f32 %v986_v17, %v794_v39  ;;  %v1090_v42 = vpop.f32.mrb[6].mxu0  ;;  %v1098_v43 = vpop.f32.mrb[6].mxu1 }
 0x2ba   : > { %815 = vst [vmem:[%s1941_s16 + $0x30] sm:$0xff] %v771_v36  ;;  %823 = vst [vmem:[%s1941_s16 + $0x70] sm:$0xff] %v803_v37  ;;  %v774_v44 = vadd.f32 %v1090_v42, %v986_v17  ;;  %v806_v45 = vadd.f32 %v1098_v43, %v986_v17  ;;  %v765_v46 = vpop.f32.mrb[7].mxu0  ;;  %v797_v47 = vpop.f32.mrb[7].mxu1 }
 0x2bb   : > { %813 = vst [vmem:[%s1941_s16 + $0x20] sm:$0xff] %v763_v40  ;;  %821 = vst [vmem:[%s1941_s16 + $0x60] sm:$0xff] %v795_v41  ;;  %v766_v48 = vadd.f32 %v986_v17, %v765_v46  ;;  %v798_v49 = vadd.f32 %v986_v17, %v797_v47 }
 0x2bc   : > { %816 = vst [vmem:[%s1941_s16 + $0x38] sm:$0xff] %v774_v44  ;;  %824 = vst [vmem:[%s1941_s16 + $0x78] sm:$0xff] %v806_v45 }
 0x2bd   : > { %814 = vst [vmem:[%s1941_s16 + $0x28] sm:$0xff] %v766_v48  ;;  %822 = vst [vmem:[%s1941_s16 + $0x68] sm:$0xff] %v798_v49 }
 0x2be PF: > { %s2133_s18 = sld [smem:[#allocation17_spill]]  ;;  %s2135_s17 = sld [smem:[#allocation20_spill]] }
 0x2bf   : > { %s2136_s8 = sld [smem:[#allocation27_spill]]  ;;  %s839_s5 = sshll.u32 %s1941_s16, 4  ;;  %s1983_s5 = int_to_ptr.vmem [resolvable:$true] %s839_s5 }
 0x2c0   : > { %s1987_s7 = scalar_lea.sflag [#allocation5], %s310_s19  ;;  %s1416_s2 = scalar_lea.vmem %s1983_s5, 2048 }
 0x2c1   : > { %p1417_p10 = scmp.ne.s32.totalorder %s1983_s5, %s1416_s2  ;;  %s1580_s13 = smov [#allocation9]  }
 0x2c2   : > { %s1420_s28 = sshll.u32 %s1580_s13, 4  ;;  %s1421_s28 = int_to_ptr.vmem [resolvable:$false] %s1420_s28 }
 0x2c3   : > { %s1422_s4 = scalar_lea.vmem %s1421_s28, 4096  ;;  %p1423_p8 = scmp.lt.s32.totalorder %s1983_s5, %s1421_s28 }
 0x2c4   : > { %s1002_s14 = sshll.u32 %s2133_s18, 11  ;;  %p2137_p0 = scmp.ne.s32.totalorder %s2135_s17, 0 }
 0x2c5   : > { %s1980_s15 = scalar_lea.hbm %s2136_s8, %s1002_s14  ;;  %p1424_p12 = scmp.lt.s32.totalorder %s1422_s4, %s1416_s2 }
 0x2c6   : > { %p1418_p11 = pnand %p1417_p10, %p2137_p0 }
 0x2c7   : > { %p1425_p13 = por %p1424_p12, %p1423_p8 }
 0x2c8   : > { %p1419_p4 = pneg %p1418_p11 }
 0x2ca   : > { %p1426_p6 = pnand %p1425_p13, %p1419_p4 }
 0x2cc   : > { %1429 = shalt.err (!%p1426_p6)
}
 0x2cd   : > { %s1430_s19 = scalar_lea.hbm %s1980_s15, 2048  ;;  %s1434_s11 = scalar_lea.hbm %s2136_s8, 4096 }
 0x2ce   : > { %p1431_p7 = scmp.ne.s32.totalorder %s1980_s15, %s1430_s19  ;;  %p1435_p9 = scmp.lt.u32.totalorder %s1980_s15, %s2136_s8 }
 0x2cf   : > { %p1436_p5 = scmp.lt.u32.totalorder %s1434_s11, %s1430_s19  ;;  %p1438_p10 = scmp.lt.u32.totalorder %s1430_s19, %s1980_s15 }
 0x2d0   : > { %p1432_p1 = pnand %p1431_p7, %p2137_p0 }
 0x2d1   : > { %p1437_p2 = por %p1436_p5, %p1435_p9 }
 0x2d2   : > { %p1433_p3 = pneg %p1432_p1 }
 0x2d3   : > { %p1439_p11 = por %p1438_p10, %p1437_p2 }
 0x2d5   : > { %p1440_p4 = pnand %p1439_p11, %p1433_p3 }
 0x2d7   : > { %1443 = shalt.err (!%p1440_p4)
}
 0x2d8   : > { %s1581_s14 = smov 128   ;;  %s1582_s3 = smov 8  }
 0x2d9   : > { %1139 = dma.vmem_to_hbm [thread:$0]  (%p2137_p0), %s1983_s5, 2048, %s1980_s15, %s1987_s7, %s1581_s14, %s1581_s14, %s1582_s3  }
 0x2da PF: > { %s2138_s10 = sld [smem:[#allocation14_spill]]  ;;  %s2139_s2 = sld [smem:[#allocation21_spill]] }
 0x2db   : > { %p1159_p8 = scmp.ge.s32.totalorder %s1570_s6, 2 }
 0x2e0   : > { %s854_s13 = sand.u32 1, %s2138_s10   ;;  %p2140_p12 = scmp.ne.s32.totalorder %s2139_s2, 0 }
 0x2e1   : > { %s855_s28 = scalar_lea.sflag [#allocation5], %s854_s13 }
 0x2e2   : > { %p1153_p13 = pnand %p1159_p8, %p2140_p12 }
 0x2e4   : > { %1513 = dma.done.wait (!%p1153_p13), %s855_s28, 2048  }
 0x2e5   : > { %1515 = vsyncadd (!%p1153_p13), %s855_s28, 4294965248  ;;  %s24_s6 = sadd.s32 1, %s1570_s6   ;;  %s2142_s18 = sld [smem:[#allocation15_spill]] }
 0x2e6   : > { %p2016_p6 = scmp.ge.s32.totalorder %s24_s6, 6   ;;  %s2143_s17 = sld [smem:[#allocation22_spill]] }
 0x2e7   : > { %s2144_s15 = smov %s2162_s24  ;;  %s2145_s19 = smov %s1526_s20 }
 0x2e8   : > { %s2146_s20 = smov %s1776_s21  ;;  %s2147_s21 = smov %s1534_s22 }
 0x2e9   : > { %s2148_s22 = smov %s1538_s23  ;;  %s2149_s23 = smov %s1832_s9 }
 0x2ea   : > { %s2150_s24 = smov %s1546_s25  ;;  %s2151_s25 = smov %s1550_s26 }
 0x2eb   : > { %s2152_s26 = smov %s1779_s12  ;;  %s2153_s27 = smov %s1562_s29 }
 0x2ec   : > { %s2154_s28 = smov %s1566_s30  ;;  %s2155_s29 = smov %s2143_s17 }
 0x2ed   : > { %s2156_s30 = smov %s2144_s15  ;;  %23 = sbr.rel (!%p2016_p6) target bundleno = 18 (0x12), region = 114 }
 0x2f4   :  { %860 = vsyncpa [#allocation4], 1 }
 0x2f5   :  { %862 = vsyncpa [#allocation4 + $0x1], 1 }
 0x2f6   :  { %863 = vsyncpa [#allocation7], 1 }
 0x2f7   :  { %865 = vsyncpa [#allocation7 + $0x1], 1 }
 0x2f8   :  { %866 = vsyncpa [#allocation5], 1 }
 0x2f9   :  { %868 = vsyncpa [#allocation5 + $0x1], 1 }

</bundles_post_ra>
